<compile_context>
chip_gen: v7x
topology: tpu7x:2x2x1
jax: 0.10.0
libtpu: 0.0.40
codegen_flags: <defaults>
</compile_context>

<pallas_src>
import functools

import jax
import jax.numpy as jnp
from jax import lax
from jax.experimental import pallas as pl
from jax.experimental.pallas import tpu as pltpu

IN_DIM = 5     # Fitter input features
OUT_DIM = 4    # Fitter output features
_LANE = 128    # TPU lane width


def _round_up(n, m):
    return ((n + m - 1) // m) * m


# ---------------------------------------------------------------------------
# Kernel: whole MLP forward for one batch tile.
#   x_ref : (tb, IN_DIM)     -- batch-major, transpose fused into fc1's dot
#   w*    : PyTorch-native (out_features, in_features), pre-cast to mxu_dtype
#   b*    : (out_features, 1) f32 columns, broadcast along the lane/batch axis
#   o_ref : (OUT_DIM, tb)    -- lane-dense store
# ---------------------------------------------------------------------------
def _mlp_kernel(x_ref, w1_ref, b1_ref, wh_ref, bh_ref, wl_ref, bl_ref, o_ref,
                *, num_hidden_layers, mxu_dtype, act_dtype):
    x = x_ref[...].astype(mxu_dtype)                      # (tb, IN_DIM), tiny cast

    # fc1: contract IN_DIM of both W1 (H, IN) and x (tb, IN) -> (H, tb).
    # The input "transpose" happens inside the contraction (XLU slot is idle
    # here, so it is effectively free) instead of as a wrapper HBM pass.
    pre = lax.dot_general(
        w1_ref[...], x,
        dimension_numbers=(((1,), (1,)), ((), ())),
        preferred_element_type=jnp.float32) + b1_ref[...]
    h = jnp.tanh(pre.astype(act_dtype))

    # Hidden layers (static unroll; same hidden width every layer).
    for i in range(num_hidden_layers):
        hm = h if h.dtype == mxu_dtype else h.astype(mxu_dtype)
        pre = jnp.dot(wh_ref[i], hm,
                      preferred_element_type=jnp.float32) + bh_ref[i]
        h = jnp.tanh(pre.astype(act_dtype))

    # fcLast (no activation): (OUT, H) @ (H, tb) -> (OUT, tb), lane-dense store.
    hm = h if h.dtype == mxu_dtype else h.astype(mxu_dtype)
    o_ref[...] = (jnp.dot(wl_ref[...], hm,
                          preferred_element_type=jnp.float32)
                  + bl_ref[...]).astype(o_ref.dtype)


# ---------------------------------------------------------------------------
# Wrapper
# ---------------------------------------------------------------------------
def _physical_vmem_bytes():
    try:
        return int(pltpu.get_tpu_info().vmem_capacity_bytes)
    except Exception:
        return 64 * 1024 * 1024       # conservative: v7x per-TC VMEM


def _default_act_dtype(mxu_dtype):
    """bf16 tanh on v6e/v7x (halves EUP work); f32 on v5e or for the f32 path."""
    if jnp.dtype(mxu_dtype) != jnp.dtype(jnp.bfloat16):
        return jnp.float32
    try:
        kind = jax.devices()[0].device_kind.lower()
    except Exception:
        kind = ""
    return jnp.float32 if "v5" in kind else jnp.bfloat16


def fitter_forward(x, params, *, batch_tile=None, mxu_dtype=jnp.bfloat16,
                   act_dtype=None):
    """x: (B, 5) float32.  params: dict of weights (see init_fitter_params).

    Weights are PyTorch-native (out_features, in_features); biases are columns
    (out_features, 1) so they broadcast along the batch/lane axis in-kernel.
    """
    w1, b1, wh, bh, wl, bl = (params["w1"], params["b1"], params["wh"],
                              params["bh"], params["wl"], params["bl"])
    B = x.shape[0]
    H = w1.shape[0]
    L = wh.shape[0]
    if act_dtype is None:
        act_dtype = _default_act_dtype(mxu_dtype)

    # Cast weights ONCE in XLA (grid-invariant); biases stay f32.
    w1c = w1.astype(mxu_dtype)
    wlc = wl.astype(mxu_dtype)
    if L > 0:
        whc = wh.astype(mxu_dtype)
        bhc = bh
    else:
        # Tiny never-read dummy stack keeps the kernel signature/BlockSpecs valid.
        whc = jnp.zeros((1, 8, 128), mxu_dtype)
        bhc = jnp.zeros((1, 8, 1), jnp.float32)
    wh_blk = whc.shape
    bh_blk = bhc.shape

    # ---- Batch tile: lane-aligned, large (amortise ~0.35us/grid-step), and an
    # even grid-step count so v7x's two TensorCores both get work. -------------
    if batch_tile is None:
        B_lanes = _round_up(B, _LANE)
        act_budget = 8 * 1024 * 1024                         # live-activation VMEM cap
        tb_cap = max(_LANE, min(4096,
                                (act_budget // max(H * 12, 1)) // _LANE * _LANE))
        tb = max(_LANE, min(tb_cap, _round_up(pl.cdiv(B_lanes, 2), _LANE)))
        steps = pl.cdiv(B_lanes, tb)
        if steps > 1 and steps % 2 == 1:                     # even step count (v7x 2 TCs)
            tb = max(_LANE, _round_up(pl.cdiv(B_lanes, steps + 1), _LANE))
    else:
        tb = batch_tile
    assert tb % _LANE == 0, "batch tile must be a multiple of 128 (lane width)"

    B_pad = _round_up(B, tb)
    x_in = x if B_pad == B else jnp.pad(x, ((0, B_pad - B), (0, 0)))

    # ---- VMEM budget guard (single-buffered weights + double-buffered I/O) ----
    weight_bytes = sum(int(a.size) * a.dtype.itemsize
                       for a in (w1c, b1, whc, bhc, wlc, bl))
    io_bytes = 2 * (tb * _LANE * 4) + 2 * (8 * tb * 4)       # x / out tiles (padded)
    act_bytes = 4 * H * tb * 4                               # rough live activations
    vmem_needed = weight_bytes + io_bytes + act_bytes
    vmem_cap = max(32 * 1024 * 1024, int(_physical_vmem_bytes() * 0.75))
    # TODO(synk): for very large H*L stream hidden weights one layer at a time
    # (memory_space=pl.ANY + pltpu.make_async_copy double-buffer) instead of
    # keeping the whole (L, H, H) stack resident (v7x: 64 MiB VMEM per TC).
    assert vmem_needed < vmem_cap, "weights too large for resident-VMEM path"
    vmem_limit = int(min(max(32 * 1024 * 1024, int(1.5 * vmem_needed)), vmem_cap))

    kernel = functools.partial(_mlp_kernel, num_hidden_layers=L,
                               mxu_dtype=mxu_dtype, act_dtype=act_dtype)

    single = pl.Buffered(1)   # grid-invariant inputs: no pointless double buffer

    out_t = pl.pallas_call(
        kernel,
        out_shape=jax.ShapeDtypeStruct((OUT_DIM, B_pad), jnp.float32),
        grid_spec=pltpu.PrefetchScalarGridSpec(
            num_scalar_prefetch=0,
            grid=(B_pad // tb,),
            in_specs=[
                pl.BlockSpec((tb, IN_DIM), lambda i: (i, 0)),          # x tile (batch, feat)
                pl.BlockSpec((H, IN_DIM), lambda i: (0, 0),
                             pipeline_mode=single),                    # w1 (out, in)
                pl.BlockSpec((H, 1), lambda i: (0, 0),
                             pipeline_mode=single),                    # b1 (out, 1)
                pl.BlockSpec(wh_blk, lambda i: (0, 0, 0),
                             pipeline_mode=single),                    # hidden Ws
                pl.BlockSpec(bh_blk, lambda i: (0, 0, 0),
                             pipeline_mode=single),                    # hidden bs
                pl.BlockSpec((OUT_DIM, H), lambda i: (0, 0),
                             pipeline_mode=single),                    # wLast
                pl.BlockSpec((OUT_DIM, 1), lambda i: (0, 0),
                             pipeline_mode=single),                    # bLast
            ],
            out_specs=pl.BlockSpec((OUT_DIM, tb), lambda i: (0, i)),   # lane-dense
        ),
        compiler_params=pltpu.CompilerParams(
            dimension_semantics=("parallel",),
            vmem_limit_bytes=vmem_limit),
    )(x_in, w1c, b1, whc, bhc, wlc, bl)

    return jnp.transpose(out_t[:, :B])                       # (B, OUT_DIM)


# ---------------------------------------------------------------------------
# Deterministic parameter init (matches Fitter.__init__ semantics):
#   weights: xavier_uniform with gain = calculate_gain('tanh') = 5/3
#   biases : PyTorch Linear default, U(-1/sqrt(fan_in), 1/sqrt(fan_in))
# Stored PyTorch-native: W (out_features, in_features), b (out_features, 1).
# ---------------------------------------------------------------------------
def _xavier_uniform(key, fan_out, fan_in, gain):
    bound = gain * (6.0 / (fan_in + fan_out)) ** 0.5
    return jax.random.uniform(key, (fan_out, fan_in), jnp.float32,
                              minval=-bound, maxval=bound)


def _bias_uniform(key, fan_in, fan_out):
    bound = 1.0 / (fan_in ** 0.5)
    return jax.random.uniform(key, (fan_out, 1), jnp.float32,
                              minval=-bound, maxval=bound)


def init_fitter_params(key, num_hidden_nodes, num_hidden_layers):
    gain = 5.0 / 3.0  # calculate_gain('tanh')
    H, L = num_hidden_nodes, num_hidden_layers
    keys = jax.random.split(key, 2 * (L + 2))
    w1 = _xavier_uniform(keys[0], H, IN_DIM, gain)
    b1 = _bias_uniform(keys[1], IN_DIM, H)
    if L > 0:
        wh = jnp.stack([_xavier_uniform(keys[2 + 2 * i], H, H, gain)
                        for i in range(L)])
        bh = jnp.stack([_bias_uniform(keys[3 + 2 * i], H, H)
                        for i in range(L)])
    else:
        wh = jnp.zeros((0, H, H), jnp.float32)
        bh = jnp.zeros((0, H, 1), jnp.float32)
    wl = _xavier_uniform(keys[2 + 2 * L], OUT_DIM, H, gain)
    bl = _bias_uniform(keys[3 + 2 * L], H, OUT_DIM)
    return dict(w1=w1, b1=b1, wh=wh, bh=bh, wl=wl, bl=bl)


# Pure-JAX reference (standard (batch, features) orientation, f32-accurate).
def fitter_reference(x, params):
    hi = jax.lax.Precision.HIGHEST
    h = jnp.tanh(jnp.matmul(x, params["w1"].T, precision=hi) + params["b1"][:, 0])
    for i in range(params["wh"].shape[0]):
        h = jnp.tanh(jnp.matmul(h, params["wh"][i].T, precision=hi)
                     + params["bh"][i, :, 0])
    return jnp.matmul(h, params["wl"].T, precision=hi) + params["bl"][:, 0]


if __name__ == "__main__":
    key = jax.random.PRNGKey(0)
    k_params, k_x = jax.random.split(key)

    num_hidden_nodes = 32
    num_hidden_layers = 2
    batch = 256   # default tiling -> two lane-aligned tiles of 128

    params = init_fitter_params(k_params, num_hidden_nodes, num_hidden_layers)
    # Fitter input: 5 features (3-body problem: time + initial conditions)
    x = jax.random.normal(k_x, (batch, IN_DIM), jnp.float32)

    ref = fitter_reference(x, params)

    # f32 MXU path: tight correctness check against the pure-JAX reference.
    out_f32 = jax.block_until_ready(
        fitter_forward(x, params, mxu_dtype=jnp.float32))
    assert out_f32.shape == (batch, OUT_DIM)
    assert jnp.allclose(out_f32, ref, rtol=1e-3, atol=1e-3), "f32 mismatch vs reference"

    # Default fast path: bf16 weights/MXU inputs, f32 accumulation + bias;
    # bf16 tanh on v6e/v7x, f32 tanh on v5e.
    out = jax.block_until_ready(fitter_forward(x, params))
    assert out.shape == (batch, OUT_DIM)
    assert jnp.allclose(out, ref, rtol=5e-2, atol=5e-2), "bf16 mismatch vs reference"

    print("KERNEL_OK")
</pallas_src>

<mosaic_0001>
module attributes {stable_mosaic.version = 11 : i64} {
  func.func @_mlp_kernel(%arg0: i32, %arg1: memref<128x5xf32, #tpu.memory_space<vmem>>, %arg2: memref<32x5xf32, #tpu.memory_space<vmem>>, %arg3: memref<32x1xf32, #tpu.memory_space<vmem>>, %arg4: memref<2x32x32xf32, #tpu.memory_space<vmem>>, %arg5: memref<2x32x1xf32, #tpu.memory_space<vmem>>, %arg6: memref<4x32xf32, #tpu.memory_space<vmem>>, %arg7: memref<4x1xf32, #tpu.memory_space<vmem>>, %arg8: memref<4x128xf32, #tpu.memory_space<vmem>>) attributes {dimension_semantics = [#tpu.dimension_semantics<parallel>], iteration_bounds = array<i64: 2>, scalar_prefetch = 0 : i64, scratch_operands = 0 : i64, tpu.core_type = #tpu.core_type<tc>, window_params = [{transform_indices = @transform_0, window_bounds = array<i64: 128, 5>}, {pipeline_mode = #tpu.pipeline_mode<synchronous>, transform_indices = @transform_1, window_bounds = array<i64: 32, 5>}, {pipeline_mode = #tpu.pipeline_mode<synchronous>, transform_indices = @transform_2, window_bounds = array<i64: 32, 1>}, {pipeline_mode = #tpu.pipeline_mode<synchronous>, transform_indices = @transform_3, window_bounds = array<i64: 2, 32, 32>}, {pipeline_mode = #tpu.pipeline_mode<synchronous>, transform_indices = @transform_4, window_bounds = array<i64: 2, 32, 1>}, {pipeline_mode = #tpu.pipeline_mode<synchronous>, transform_indices = @transform_5, window_bounds = array<i64: 4, 32>}, {pipeline_mode = #tpu.pipeline_mode<synchronous>, transform_indices = @transform_6, window_bounds = array<i64: 4, 1>}, {transform_indices = @transform_7, window_bounds = array<i64: 4, 128>}]} {
    %c0 = arith.constant 0 : index
    %c0_0 = arith.constant 0 : index
    %0 = vector.load %arg1[%c0, %c0_0] : memref<128x5xf32, #tpu.memory_space<vmem>>, vector<128x5xf32>
    %c0_1 = arith.constant 0 : index
    %c0_2 = arith.constant 0 : index
    %1 = vector.load %arg2[%c0_1, %c0_2] : memref<32x5xf32, #tpu.memory_space<vmem>>, vector<32x5xf32>
    %cst = arith.constant dense<0.000000e+00> : vector<32x128xf32>
    %2 = tpu.matmul %1, %0, %cst {dimension_numbers = #tpu.dot_dimension_numbers<[1], [1], [0], [0], [0, 0, 1, 0], [], []>} : vector<32x5xf32>, vector<128x5xf32>, vector<32x128xf32> -> vector<32x128xf32>
    %c0_3 = arith.constant 0 : index
    %c0_4 = arith.constant 0 : index
    %3 = vector.load %arg3[%c0_3, %c0_4] : memref<32x1xf32, #tpu.memory_space<vmem>>, vector<32x1xf32>
    %4 = vector.broadcast %3 : vector<32x1xf32> to vector<32x128xf32>
    %5 = arith.addf %2, %4 : vector<32x128xf32>
    %6 = math.tanh %5 : vector<32x128xf32>
    %c0_5 = arith.constant 0 : index
    %c0_6 = arith.constant 0 : index
    %c0_7 = arith.constant 0 : index
    %7 = vector.load %arg4[%c0_5, %c0_6, %c0_7] : memref<2x32x32xf32, #tpu.memory_space<vmem>>, vector<1x32x32xf32>
    %8 = vector.shape_cast %7 : vector<1x32x32xf32> to vector<32x32xf32>
    %cst_8 = arith.constant dense<0.000000e+00> : vector<32x128xf32>
    %9 = tpu.matmul %8, %6, %cst_8 {dimension_numbers = #tpu.dot_dimension_numbers<[1], [0], [0], [1], [0, 0, 1, 1], [], []>} : vector<32x32xf32>, vector<32x128xf32>, vector<32x128xf32> -> vector<32x128xf32>
    %c0_9 = arith.constant 0 : index
    %c0_10 = arith.constant 0 : index
    %c0_11 = arith.constant 0 : index
    %10 = vector.load %arg5[%c0_9, %c0_10, %c0_11] : memref<2x32x1xf32, #tpu.memory_space<vmem>>, vector<1x32x1xf32>
    %11 = vector.shape_cast %10 : vector<1x32x1xf32> to vector<32x1xf32>
    %12 = vector.broadcast %11 : vector<32x1xf32> to vector<32x128xf32>
    %13 = arith.addf %9, %12 : vector<32x128xf32>
    %14 = math.tanh %13 : vector<32x128xf32>
    %c1 = arith.constant 1 : index
    %c0_12 = arith.constant 0 : index
    %c0_13 = arith.constant 0 : index
    %15 = vector.load %arg4[%c1, %c0_12, %c0_13] : memref<2x32x32xf32, #tpu.memory_space<vmem>>, vector<1x32x32xf32>
    %16 = vector.shape_cast %15 : vector<1x32x32xf32> to vector<32x32xf32>
    %cst_14 = arith.constant dense<0.000000e+00> : vector<32x128xf32>
    %17 = tpu.matmul %16, %14, %cst_14 {dimension_numbers = #tpu.dot_dimension_numbers<[1], [0], [0], [1], [0, 0, 1, 1], [], []>} : vector<32x32xf32>, vector<32x128xf32>, vector<32x128xf32> -> vector<32x128xf32>
    %c1_15 = arith.constant 1 : index
    %c0_16 = arith.constant 0 : index
    %c0_17 = arith.constant 0 : index
    %18 = vector.load %arg5[%c1_15, %c0_16, %c0_17] : memref<2x32x1xf32, #tpu.memory_space<vmem>>, vector<1x32x1xf32>
    %19 = vector.shape_cast %18 : vector<1x32x1xf32> to vector<32x1xf32>
    %20 = vector.broadcast %19 : vector<32x1xf32> to vector<32x128xf32>
    %21 = arith.addf %17, %20 : vector<32x128xf32>
    %22 = math.tanh %21 : vector<32x128xf32>
    %c0_18 = arith.constant 0 : index
    %c0_19 = arith.constant 0 : index
    %23 = vector.load %arg6[%c0_18, %c0_19] : memref<4x32xf32, #tpu.memory_space<vmem>>, vector<4x32xf32>
    %cst_20 = arith.constant dense<0.000000e+00> : vector<4x128xf32>
    %24 = tpu.matmul %23, %22, %cst_20 {dimension_numbers = #tpu.dot_dimension_numbers<[1], [0], [0], [1], [0, 0, 1, 1], [], []>} : vector<4x32xf32>, vector<32x128xf32>, vector<4x128xf32> -> vector<4x128xf32>
    %c0_21 = arith.constant 0 : index
    %c0_22 = arith.constant 0 : index
    %25 = vector.load %arg7[%c0_21, %c0_22] : memref<4x1xf32, #tpu.memory_space<vmem>>, vector<4x1xf32>
    %26 = vector.broadcast %25 : vector<4x1xf32> to vector<4x128xf32>
    %27 = arith.addf %24, %26 : vector<4x128xf32>
    %c0_23 = arith.constant 0 : index
    %c0_24 = arith.constant 0 : index
    %28 = vector.load %arg8[%c0_23, %c0_24] : memref<4x128xf32, #tpu.memory_space<vmem>>, vector<4x128xf32>
    tpu.vector_store %arg8[%c0_23, %c0_24], %27 {strides = array<i32>} : memref<4x128xf32, #tpu.memory_space<vmem>>, vector<4x128xf32>,
    return
  }
  func.func @transform_0(%arg0: i32) -> (i32, i32) {
    %c0_i32 = arith.constant 0 : i32
    %c0_i32_0 = arith.constant 0 : i32
    return %arg0, %c0_i32 : i32, i32
  }
  func.func @transform_1(%arg0: i32) -> (i32, i32) {
    %c0_i32 = arith.constant 0 : i32
    %c0_i32_0 = arith.constant 0 : i32
    %c0_i32_1 = arith.constant 0 : i32
    return %c0_i32, %c0_i32_0 : i32, i32
  }
  func.func @transform_2(%arg0: i32) -> (i32, i32) {
    %c0_i32 = arith.constant 0 : i32
    %c0_i32_0 = arith.constant 0 : i32
    %c0_i32_1 = arith.constant 0 : i32
    return %c0_i32, %c0_i32_0 : i32, i32
  }
  func.func @transform_3(%arg0: i32) -> (i32, i32, i32) {
    %c0_i32 = arith.constant 0 : i32
    %c0_i32_0 = arith.constant 0 : i32
    %c0_i32_1 = arith.constant 0 : i32
    %c0_i32_2 = arith.constant 0 : i32
    return %c0_i32, %c0_i32_0, %c0_i32_1 : i32, i32, i32
  }
  func.func @transform_4(%arg0: i32) -> (i32, i32, i32) {
    %c0_i32 = arith.constant 0 : i32
    %c0_i32_0 = arith.constant 0 : i32
    %c0_i32_1 = arith.constant 0 : i32
    %c0_i32_2 = arith.constant 0 : i32
    return %c0_i32, %c0_i32_0, %c0_i32_1 : i32, i32, i32
  }
  func.func @transform_5(%arg0: i32) -> (i32, i32) {
    %c0_i32 = arith.constant 0 : i32
    %c0_i32_0 = arith.constant 0 : i32
    %c0_i32_1 = arith.constant 0 : i32
    return %c0_i32, %c0_i32_0 : i32, i32
  }
  func.func @transform_6(%arg0: i32) -> (i32, i32) {
    %c0_i32 = arith.constant 0 : i32
    %c0_i32_0 = arith.constant 0 : i32
    %c0_i32_1 = arith.constant 0 : i32
    return %c0_i32, %c0_i32_0 : i32, i32
  }
  func.func @transform_7(%arg0: i32) -> (i32, i32) {
    %c0_i32 = arith.constant 0 : i32
    %c0_i32_0 = arith.constant 0 : i32
    return %c0_i32, %arg0 : i32, i32
  }
}

</mosaic_0001>

<bundles_post_ra>
// kernel: tpu_custom_call.1
= control target key start
LH: loop header
LB: loop body
LE: loop exit
PB: predicated region body
PF: predicated region fallthrough
CT: control target
= control target key end

     0   :  { %12 = vsyncpa [#allocation3], 0  ;;  %s1548_s0 = inlined_call_operand.vmem [shape: f32[256,5], index: 0, kind: input, shape index: {}]   ;;  %s1549_s1 = inlined_call_operand.vmem [shape: f32[32,5], index: 1, kind: input, shape index: {}]   ;;  %s1550_s2 = inlined_call_operand.vmem [shape: f32[32,1], index: 2, kind: input, shape index: {}]   ;;  %s1551_s3 = inlined_call_operand.vmem [shape: f32[2,32,32], index: 3, kind: input, shape index: {}]   ;;  %s1552_s4 = inlined_call_operand.vmem [shape: f32[2,32,1], index: 4, kind: input, shape index: {}]   ;;  %s1553_s5 = inlined_call_operand.vmem [shape: f32[4,32], index: 5, kind: input, shape index: {}]   ;;  %s1554_s6 = inlined_call_operand.vmem [shape: f32[4,1], index: 6, kind: input, shape index: {}]   ;;  %s1555_s7 = inlined_call_operand.hbm [shape: f32[4,256], index: 7, kind: output, shape index: {}]  }
   0x1   :  { %14 = vsyncpa [#allocation3 + $0x1], 0  ;;  %s1302_s24 = smov 0   ;;  %s1304_s25 = smov 0  }
   0x2   :  { %s1306_s26 = smov 0   ;;  %s1308_s27 = smov 0  }
   0x3 LB: > { %s1323_s28 = sadd.s32 4294967295, %s1255_s27   ;;  %s888_s29 = sadd.s32 4294967294, %s1255_s27   ;;  %s1255_s27 = sphi %s1308_s27, %s1563_s27   ;;  %s1251_s26 = sphi %s1306_s26, %s1562_s26   ;;  %s1247_s25 = sphi %s1304_s25, %s1561_s25   ;;  %s1243_s24 = sphi %s1302_s24, %s1560_s24  }
   0x4   : > { %s1327_s30 = sadd.s32 1, %s1255_s27   ;;  %s179_s8 = sadd.s32 1, %s1251_s26 }
   0x5   : > { %s176_s9 = ssub.s32 %s1255_s27, %s1327_s30  ;;  %p189_p0 = scmp.ne.s32.totalorder %s1251_s26, %s1247_s25 }
   0x6   : > { %p177_p1 = scmp.eq.s32.totalorder %s176_s9, 0  ;;  %p190_p2 = scmp.eq.s32.totalorder %s1323_s28, 1 }
   0x7   : > { %p195_p3 = scmp.ne.s32.totalorder %s1247_s25, %s1243_s24  ;;  %p196_p4 = scmp.eq.s32.totalorder %s888_s29, 1 }
   0x8   : > { %s1338_s10 = scalar_select %p177_p1, %s1251_s26, %s179_s8  }
   0x9   : > { %p1340_p5 = por %p190_p2, %p189_p0  ;;  %p1344_p6 = por %p196_p4, %p195_p3 }
   0xa   : > { %p891_p7 = scmp.ge.s32.totalorder %s1255_s27, 1  ;;  %p241_p8 = scmp.lt.s32.totalorder %s1255_s27, 3 }
   0xc   : > { %p242_p9 = pnand %p891_p7, %p241_p8 }
   0xd   : > { %s893_s13 = sshll.u32 (!%p242_p9), %s1323_s28, 4  ;;  %vm323_vm0 = vcmask (!%p242_p9), 39936   ;;  %v295_v0 = vld [vmem:[%s1549_s1] sm:$0xff] (!%p242_p9)  ;;  %v1257_v1 = vmov (!%p242_p9), 0   ;;  %v301_v3 = vld [vmem:[%s1550_s2 + $0x10] sm:$0xff] (!%p242_p9)  ;;  %v300_v4 = vld [vmem:[%s1550_s2 + $0x8] sm:$0xff] (!%p242_p9) }
   0xe   : > { %245 = sbr.rel (%p242_p9) target bundleno = 1026 (0x402), region = 48  ;;  %p274_p10 = scmp.lt.s32.totalorder (!%p242_p9), %s893_s13, 31  ;;  %1009 = vmatprep.mubr.msk.f32.mxu0 (!%p242_p9), %vm323_vm0, %v295_v0  ;;  %1167 = vset.pattern.permute.xlu0 (!%p242_p9), %v1257_v1  ;;  %v299_v2 = vld [vmem:[%s1550_s2] sm:$0xff] (!%p242_p9)  ;;  %v302_v5 = vld [vmem:[%s1550_s2 + $0x18] sm:$0xff] (!%p242_p9)  ;;  %vm1374_vm1 = vmpackc.low (!%p242_p9), %vm323_vm0, %vm323_vm0  ;;  %vm501_vm2 = vcmask (!%p242_p9), 261120   ;;  %vm1259_vm3 = vmmov (!%p242_p9), 0  }
   0xf   : > { %305 = vperm.xlu0 (!%p242_p9), %1167, %v299_v2   ;;  %1168 = vset.pattern.permute.xlu1 (!%p242_p9), %v1257_v1  ;;  %v477_v7 = vld [vmem:[%s1552_s4] sm:$0xff] (!%p242_p9)  ;;  %v478_v13 = vld [vmem:[%s1552_s4 + $0x8] sm:$0xff] (!%p242_p9)  ;;  %v479_v15 = vld [vmem:[%s1552_s4 + $0x10] sm:$0xff] (!%p242_p9)  ;;  %s270_s16 = sand.u32 (!%p242_p9), 1, %s1247_s25   ;;  %s933_s17 = sshll.u32 (!%p242_p9), %s1323_s28, 6 }
  0x10   : > { %315 = vperm.xlu1 (!%p242_p9), %1168, %v301_v3   ;;  %v480_v16 = vld [vmem:[%s1552_s4 + $0x18] sm:$0xff] (!%p242_p9)  ;;  %v923_v19 = vld [vmem:[%s1552_s4 + $0x20] sm:$0xff] (!%p242_p9)  ;;  %v924_v21 = vld [vmem:[%s1552_s4 + $0x28] sm:$0xff] (!%p242_p9)  ;;  %s1506_s22 = scalar_lea.hbm (!%p242_p9), %s1555_s7, %s933_s17  ;;  %s1261_s28 = smov (!%p242_p9), [#allocation2]  }
  0x11   : > { %v925_v22 = vld [vmem:[%s1552_s4 + $0x30] sm:$0xff] (!%p242_p9)  ;;  %v926_v23 = vld [vmem:[%s1552_s4 + $0x38] sm:$0xff] (!%p242_p9)  ;;  %v735_v26 = vld [vmem:[%s1554_s6] sm:$0xf] (!%p242_p9) }
  0x12   : > { %v296_v40 = vld [vmem:[%s1549_s1 + $0x8] sm:$0xff] (!%p242_p9)  ;;  %v297_v41 = vld [vmem:[%s1549_s1 + $0x10] sm:$0xff] (!%p242_p9)  ;;  %v298_v42 = vld [vmem:[%s1549_s1 + $0x18] sm:$0xff] (!%p242_p9) }
  0x13   : > { %310 = vperm.xlu0 (!%p242_p9), %1167, %v300_v4   ;;  %v473_v43 = vld [vmem:[%s1551_s3] sm:$0xff] (!%p242_p9)  ;;  %v474_v62 = vld [vmem:[%s1551_s3 + $0x8] sm:$0xff] (!%p242_p9)  ;;  %v475_v63 = vld [vmem:[%s1551_s3 + $0x10] sm:$0xff] (!%p242_p9) }
  0x14   : > { %320 = vperm.xlu1 (!%p242_p9), %1168, %v302_v5   ;;  %1023 = vmatprep.mubr.msk.f32.mxu1 (!%p242_p9), %vm501_vm2, %v473_v43  ;;  %v476_v0 = vld [vmem:[%s1551_s3 + $0x18] sm:$0xff] (!%p242_p9)  ;;  %v919_v1 = vld [vmem:[%s1551_s3 + $0x20] sm:$0xff] (!%p242_p9) }
  0x15   : > { %s1565_s13 = smov (!%p274_p10, %s893_s13), 31  ;;  %v734_v43 = vld [vmem:[%s1553_s5] sm:$0xf] }
  0x16   : > { %s894_s29 = sshll.u32 %s1565_s13, 3  ;;  %s892_s13 = sshll.u32 %s270_s16, 2 }
  0x17   : > { %s1370_s14 = scalar_lea.vmem %s1548_s0, %s894_s29  ;;  %483 = vperm.xlu0 %1167, %v477_v7   ;;  %s272_s18 = scalar_lea.vmem [#allocation2], %s892_s13 }
  0x18   : > { %v279_v8 = vld [vmem:[%s1370_s14] sm:$0xff]  ;;  %v280_v9 = vld [vmem:[%s1370_s14 + $0x8] sm:$0xff]  ;;  %v281_v10 = vld [vmem:[%s1370_s14 + $0x10] sm:$0xff]  ;;  %488 = vperm.xlu1 %1168, %v478_v13   ;;  %s829_s19 = sshll.u32 %s272_s18, 4  ;;  %s1197_s29 = sshll.u32 %s1261_s28, 4  ;;  %s1508_s19 = int_to_ptr.vmem [resolvable:$true] %s829_s19  ;;  %s1198_s29 = int_to_ptr.vmem [resolvable:$false] %s1197_s29 }
  0x19   : > { %v1054_v11 = vpack.c.bf16 %v280_v9, %v279_v8  ;;  %v282_v12 = vld [vmem:[%s1370_s14 + $0x18] sm:$0xff]  ;;  %v283_v17 = vld [vmem:[%s1370_s14 + $0x20] sm:$0xff]  ;;  %v284_v18 = vld [vmem:[%s1370_s14 + $0x28] sm:$0xff]  ;;  %s1193_s23 = scalar_lea.vmem %s1508_s19, 64  ;;  %s1199_s8 = scalar_lea.vmem %s1198_s29, 128 }
  0x1a   : > { %v1060_v14 = vpack.c.bf16 %v282_v12, %v281_v10  ;;  %v1066_v20 = vpack.c.bf16 %v284_v18, %v283_v17  ;;  %v285_v24 = vld [vmem:[%s1370_s14 + $0x30] sm:$0xff]  ;;  %v286_v25 = vld [vmem:[%s1370_s14 + $0x38] sm:$0xff]  ;;  %v287_v28 = vld [vmem:[%s1370_s14 + $0x40] sm:$0xff]  ;;  %p1194_p11 = scmp.ne.s32.totalorder %s1508_s19, %s1193_s23  ;;  %p1200_p0 = scmp.lt.s32.totalorder %s1508_s19, %s1198_s29 }
  0x1b   : > { %1056 = vmatprep.subr.msk.bf16.mxu0 %vm1374_vm1, %v1054_v11  ;;  %493 = vperm.xlu0 %1167, %v479_v15   ;;  %v1072_v27 = vpack.c.bf16 %v286_v25, %v285_v24  ;;  %v288_v29 = vld [vmem:[%s1370_s14 + $0x48] sm:$0xff]  ;;  %v289_v31 = vld [vmem:[%s1370_s14 + $0x50] sm:$0xff]  ;;  %v290_v32 = vld [vmem:[%s1370_s14 + $0x58] sm:$0xff]  ;;  %v1260_v24 = vmov 0.0   ;;  %p1201_p1 = scmp.lt.s32.totalorder %s1199_s8, %s1193_s23 }
  0x1c   : > { %1059 = vmatpush3.bf16.xpose.msk.msra.mxu0 %vm1374_vm1, %v1054_v11  ;;  %498 = vperm.xlu1 %1168, %v480_v16   ;;  %v1078_v30 = vpack.c.bf16 %v288_v29, %v287_v28  ;;  %v1084_v33 = vpack.c.bf16 %v290_v32, %v289_v31  ;;  %v291_v34 = vld [vmem:[%s1370_s14 + $0x60] sm:$0xff]  ;;  %v292_v35 = vld [vmem:[%s1370_s14 + $0x68] sm:$0xff]  ;;  %v293_v37 = vld [vmem:[%s1370_s14 + $0x70] sm:$0xff]  ;;  %p1195_p12 = pnand %p1194_p11, %p1340_p5 }
  0x1d   : > { %1062 = vmatprep.subr.msk.bf16.mxu0 %vm1374_vm1, %v1060_v14  ;;  %v1090_v36 = vpack.c.bf16 %v292_v35, %v291_v34  ;;  %v294_v38 = vld [vmem:[%s1370_s14 + $0x78] sm:$0xff]  ;;  %s816_s14 = scalar_lea.sflag [#allocation3], %s270_s16  ;;  %p1202_p2 = por %p1201_p1, %p1200_p0 }
  0x1e   : > { %v1096_v39 = vpack.c.bf16 %v294_v38, %v293_v37  ;;  %p1196_p13 = pneg %p1195_p12 }
  0x1f   : > { %615 = vperm.xlu0 %1167, %v923_v19  }
  0x20   : > { %620 = vperm.xlu1 %1168, %v924_v21   ;;  %v921_v21 = vld [vmem:[%s1551_s3 + $0x30] sm:$0xff]  ;;  %p1203_p3 = pnand %p1202_p2, %p1196_p13 }
  0x23   : > { %625 = vperm.xlu0 %1167, %v925_v22   ;;  %v922_v22 = vld [vmem:[%s1551_s3 + $0x38] sm:$0xff] }
  0x24   : > { %1065 = vmatpush3.bf16.xpose.msk.msra.mxu0 %vm1374_vm1, %v1060_v14  ;;  %630 = vperm.xlu1 %1168, %v926_v23   ;;  %v1258_v23 = vmov 0.0|0.0  }
  0x25   : > { %1068 = vmatprep.subr.msk.bf16.mxu0 %vm1374_vm1, %v1066_v20 }
  0x27   : > { %738 = vperm.xlu0 %1167, %v735_v26  }
  0x2c   : > { %1071 = vmatpush3.bf16.xpose.msk.msra.mxu0 %vm1374_vm1, %v1066_v20  ;;  %v920_v20 = vld [vmem:[%s1551_s3 + $0x28] sm:$0xff] }
  0x2d   : > { %1074 = vmatprep.subr.msk.bf16.mxu0 %vm1374_vm1, %v1072_v27 }
  0x34   : > { %1077 = vmatpush3.bf16.xpose.msk.msra.mxu0 %vm1374_vm1, %v1072_v27 }
  0x35   : > { %1080 = vmatprep.subr.msk.bf16.mxu0 %vm1374_vm1, %v1078_v30 }
  0x3c   : > { %1083 = vmatpush3.bf16.xpose.msk.msra.mxu0 %vm1374_vm1, %v1078_v30 }
  0x3d   : > { %1086 = vmatprep.subr.msk.bf16.mxu0 %vm1374_vm1, %v1084_v33 }
  0x44   : > { %1089 = vmatpush3.bf16.xpose.msk.msra.mxu0 %vm1374_vm1, %v1084_v33 }
  0x45   : > { %1092 = vmatprep.subr.msk.bf16.mxu0 %vm1374_vm1, %v1090_v36 }
  0x4c   : > { %1095 = vmatpush3.bf16.xpose.msk.msra.mxu0 %vm1374_vm1, %v1090_v36 }
  0x4d   : > { %1098 = vmatprep.subr.msk.bf16.mxu0 %vm1374_vm1, %v1096_v39 }
  0x54   : > { %1101 = vmatpush3.bf16.xpose.msk.msra.mxu0 %vm1374_vm1, %v1096_v39 }
  0x5b   : > { %1010 = vmatmul.mubr.msk.f32.vlgmr.msra.gmra.mrb[0].mxu0 %vm323_vm0, %v296_v40 }
  0x5c   : > { %1012 = vmatprep.mubr.msk.f32.mxu0 %vm323_vm0, %v297_v41 }
  0x5f   : > { %1013 = vmatmul.mubr.msk.f32.gmra.mrb[2].mxu0 %vm323_vm0, %v298_v42 }
  0x8e   : > { %v306_v44 = vpop.permute.xlu0 %305 }
  0x8f   : > { %v316_v45 = vpop.permute.xlu1 %315 }
  0x92   : > { %v311_v46 = vpop.permute.xlu0 %310 }
  0x93   : > { %v321_v51 = vpop.permute.xlu1 %320 }
  0x96   : > { %v484_v3 = vpop.permute.xlu0 %483 }
  0x97   : > { %v489_v2 = vpop.permute.xlu1 %488 }
  0x9a   : > { %v494_v10 = vpop.permute.xlu0 %493 }
  0x9b   : > { %v499_v8 = vpop.permute.xlu1 %498 }
  0x9e   : > { %v616_v26 = vpop.permute.xlu0 %615 }
  0x9f   : > { %v621_v25 = vpop.permute.xlu1 %620 }
  0xa2   : > { %v626_v33 = vpop.permute.xlu0 %625 }
  0xa3   : > { %v631_v31 = vpop.permute.xlu1 %630 }
 0x12e   : > { %v1011_v47 = vpop.f32.mrb[0].mxu0 }
 0x12f   : > { %v456_v48 = vadd.f32 %v1011_v47, %v311_v46  ;;  %v450_v49 = vpop.f32.mrb[1].mxu0 }
 0x130   : > { %v451_v50 = vadd.f32 %v450_v49, %v306_v44  ;;  %v739_v44 = vpop.permute.xlu0 %738 }
 0x131   : > { %1169 = vtanh.f32 %v456_v48 }
 0x132   : > { %1171 = vtanh.f32 %v451_v50  ;;  %v1014_v52 = vpop.f32.mrb[2].mxu0 }
 0x133   : > { %v466_v53 = vadd.f32 %v1014_v52, %v321_v51  ;;  %v460_v54 = vpop.f32.mrb[3].mxu0 }
 0x134   : > { %v461_v55 = vadd.f32 %v460_v54, %v316_v45 }
 0x135   : > { %1173 = vtanh.f32 %v466_v53 }
 0x136   : > { %1175 = vtanh.f32 %v461_v55 }
 0x13b   : > { %v1170_v56 = vpop.eup %1169 }
 0x13c   : > { %v1172_v57 = vpop.eup %1171 }
 0x13d   : > { %v1102_v58 = vpack.c.bf16 %v1170_v56, %v1172_v57 }
 0x13f   : > { %v1174_v59 = vpop.eup %1173  ;;  %1103 = vmatprep.subr.bf16.mxu1 %v1102_v58 }
 0x140   : > { %v1176_v60 = vpop.eup %1175  ;;  %1105 = vmatpush3.bf16.msra.mxu1 %v1102_v58 }
 0x141   : > { %v1106_v61 = vpack.c.bf16 %v1174_v59, %v1176_v60 }
 0x143   : > { %1107 = vmatprep.subr.bf16.mxu1 %v1106_v61 }
 0x144   : > { %1109 = vmatpush3.bf16.msra.mxu1 %v1106_v61 }
 0x147   : > { %1024 = vmatmul.mubr.msk.f32.vlgmr.msra.gmra.mrb[0].mxu1 %vm501_vm2, %v474_v62 }
 0x148   : > { %1026 = vmatprep.mubr.msk.f32.mxu1 %vm501_vm2, %v475_v63 }
 0x14b   : > { %1027 = vmatmul.mubr.msk.f32.gmra.mrb[2].mxu1 %vm501_vm2, %v476_v0 }
 0x14c   : > { %1037 = vmatprep.mubr.msk.f32.mxu1 %vm501_vm2, %v919_v1 }
 0x21a   : > { %v1025_v4 = vpop.f32.mrb[0].mxu1 }
 0x21b   : > { %v586_v5 = vadd.f32 %v1025_v4, %v489_v2  ;;  %v580_v6 = vpop.f32.mrb[1].mxu1 }
 0x21c   : > { %v581_v7 = vadd.f32 %v580_v6, %v484_v3 }
 0x21d   : > { %1177 = vtanh.f32 %v586_v5 }
 0x21e   : > { %1179 = vtanh.f32 %v581_v7  ;;  %v1028_v9 = vpop.f32.mrb[2].mxu1 }
 0x21f   : > { %v596_v11 = vadd.f32 %v1028_v9, %v499_v8  ;;  %v590_v12 = vpop.f32.mrb[3].mxu1 }
 0x220   : > { %v591_v13 = vadd.f32 %v590_v12, %v494_v10 }
 0x221   : > { %1181 = vtanh.f32 %v596_v11 }
 0x222   : > { %1183 = vtanh.f32 %v591_v13 }
 0x227   : > { %v1178_v14 = vpop.eup %1177 }
 0x228   : > { %v1180_v15 = vpop.eup %1179 }
 0x229   : > { %v1110_v16 = vpack.c.bf16 %v1178_v14, %v1180_v15 }
 0x22b   : > { %v1182_v17 = vpop.eup %1181  ;;  %1111 = vmatprep.subr.bf16.mxu1 %v1110_v16 }
 0x22c   : > { %v1184_v18 = vpop.eup %1183  ;;  %1113 = vmatpush3.bf16.msra.mxu1 %v1110_v16 }
 0x22d   : > { %v1114_v19 = vpack.c.bf16 %v1182_v17, %v1184_v18 }
 0x22f   : > { %1115 = vmatprep.subr.bf16.mxu1 %v1114_v19 }
 0x230   : > { %1117 = vmatpush3.bf16.msra.mxu1 %v1114_v19 }
 0x231   : > { %1118 = vmatprep.subr.bf16.mxu1 %v1258_v23 }
 0x233   : > { %1038 = vmatmul.mubr.msk.f32.vlgmr.msra.gmra.mrb[4].mxu1 %vm501_vm2, %v920_v20 }
 0x234   : > { %1040 = vmatprep.mubr.msk.f32.mxu1 %vm501_vm2, %v921_v21 }
 0x237   : > { %1041 = vmatmul.mubr.msk.f32.gmra.mrb[6].mxu1 %vm501_vm2, %v922_v22 }
 0x238   : > { %1051 = vmatprep.mubr.msk.f32.mxu1 %vm1259_vm3, %v1260_v24 }
 0x306   : > { %v1039_v27 = vpop.f32.mrb[4].mxu1 }
 0x307   : > { %v717_v28 = vadd.f32 %v1039_v27, %v621_v25  ;;  %v711_v29 = vpop.f32.mrb[5].mxu1 }
 0x308   : > { %v712_v30 = vadd.f32 %v711_v29, %v616_v26 }
 0x309   : > { %1185 = vtanh.f32 %v717_v28 }
 0x30a   : > { %1187 = vtanh.f32 %v712_v30  ;;  %v1042_v32 = vpop.f32.mrb[6].mxu1 }
 0x30b   : > { %v727_v34 = vadd.f32 %v1042_v32, %v631_v31  ;;  %v721_v35 = vpop.f32.mrb[7].mxu1 }
 0x30c   : > { %v722_v36 = vadd.f32 %v721_v35, %v626_v33 }
 0x30d   : > { %1189 = vtanh.f32 %v727_v34 }
 0x30e   : > { %1191 = vtanh.f32 %v722_v36 }
 0x313   : > { %v1186_v37 = vpop.eup %1185 }
 0x314   : > { %v1188_v38 = vpop.eup %1187 }
 0x315   : > { %v1119_v39 = vpack.c.bf16 %v1186_v37, %v1188_v38 }
 0x317   : > { %v1190_v40 = vpop.eup %1189  ;;  %1120 = vmatpush3.bf16.msra.mxu1 %v1119_v39 }
 0x318   : > { %v1192_v41 = vpop.eup %1191  ;;  %1121 = vmatprep.subr.bf16.mxu1 %v1258_v23 }
 0x319   : > { %v1122_v42 = vpack.c.bf16 %v1190_v40, %v1192_v41 }
 0x31b   : > { %1123 = vmatpush3.bf16.msra.mxu1 %v1122_v42 }
 0x31e   : > { %1052 = vmatmul.mubr.msk.f32.vlgmr.msra.gmra.mrb[8].mxu1 %vm501_vm2, %v734_v43 }
 0x3f1   : > { %v810_v45 = vpop.f32.mrb[8].mxu1 }
 0x3f2   : > { %v811_v46 = vadd.f32 %v810_v45, %v739_v44  ;;  %v1053_v47 = vpop.f32.mrb[9].mxu1 }
 0x3f4   : > { %814 = vst [vmem:[%s272_s18] sm:$0xf] %v811_v46 }
 0x3f5   : > { %1206 = shalt.err (!%p1203_p3)
}
 0x3f6   : > { %s1207_s9 = scalar_lea.hbm %s1506_s22, 64  ;;  %s1211_s13 = scalar_lea.hbm %s1555_s7, 128 }
 0x3f7   : > { %p1208_p4 = scmp.ne.s32.totalorder %s1506_s22, %s1207_s9  ;;  %p1212_p9 = scmp.lt.u32.totalorder %s1506_s22, %s1555_s7 }
 0x3f8   : > { %p1213_p10 = scmp.lt.u32.totalorder %s1211_s13, %s1207_s9  ;;  %p1215_p12 = scmp.lt.u32.totalorder %s1207_s9, %s1506_s22 }
 0x3f9   : > { %p1209_p7 = pnand %p1208_p4, %p1340_p5 }
 0x3fa   : > { %p1214_p11 = por %p1213_p10, %p1212_p9 }
 0x3fb   : > { %p1210_p8 = pneg %p1209_p7 }
 0x3fc   : > { %p1216_p13 = por %p1215_p12, %p1214_p11 }
 0x3fe   : > { %p1217_p0 = pnand %p1216_p13, %p1210_p8 }
 0x400   : > { %1220 = shalt.err (!%p1217_p0)
}
 0x401   : > { %1124 = dma.vmem_to_hbm [thread:$0]  (%p1340_p5), %s1508_s19, 64, %s1506_s22, %s816_s14  }
 0x402 PF: > { %p1130_p1 = scmp.ge.s32.totalorder %s1255_s27, 2  ;;  %s841_s20 = sand.u32 1, %s1243_s24  }
 0x403   : > { %s842_s21 = scalar_lea.sflag [#allocation3], %s841_s20 }
 0x404   : > { %p1127_p2 = pnand %p1130_p1, %p1344_p6 }
 0x406   : > { %1238 = dma.done.wait (!%p1127_p2), %s842_s21, 64  }
 0x407   : > { %1240 = vsyncadd (!%p1127_p2), %s842_s21, 4294967232  ;;  %p17_p3 = scmp.ge.s32.totalorder %s1327_s30, 4   ;;  %s1560_s24 = smov %s1247_s25 }
 0x408   : > { %s1561_s25 = smov %s1251_s26  ;;  %s1562_s26 = smov %s1338_s10 }
 0x409   : > { %s1563_s27 = smov %s1327_s30  ;;  %19 = sbr.rel (!%p17_p3) target bundleno = 3 (0x3), region = 85 }
 0x410   :  { %847 = vsyncpa [#allocation3], 1 }
 0x411   :  { %849 = vsyncpa [#allocation3 + $0x1], 1 }

</bundles_post_ra>
